<compile_context>
chip_gen: v5e
topology: v5e:2x2
jax: 0.10.0
libtpu: 0.0.40
codegen_flags: <defaults>
</compile_context>

<pallas_src>
import functools

import jax
import jax.numpy as jnp
from jax.experimental import pallas as pl
from jax.experimental.pallas import tpu as pltpu


# --------------------------------------------------------------------------
# Small helpers
# --------------------------------------------------------------------------
def _round_up(x, m):
    return (x + m - 1) // m * m


def _lane_pad(x):
    # 128-lane granule; dims >128 round to 256 so v6e/v7x's 2x256^2 MXUs see
    # full-width operands (harmless extra zero padding on v5e).
    return _round_up(x, 128) if x <= 128 else _round_up(x, 256)


def _pad2(x, rows, cols, dtype=None):
    y = jnp.pad(x, ((0, rows - x.shape[0]), (0, cols - x.shape[1])))
    return y if dtype is None else y.astype(dtype)


@functools.lru_cache(maxsize=None)
def _vmem_capacity_bytes():
    try:
        return int(pltpu.get_tpu_info().vmem_capacity_bytes)
    except Exception:
        return 64 * 1024 * 1024          # conservative: v7x per-TensorCore VMEM


def _default_tile_and_limit():
    vmem = _vmem_capacity_bytes()
    if vmem >= 100 * 1024 * 1024:        # v5e / v6e: 128 MiB physical VMEM
        return 512, 100 * 1024 * 1024
    return 256, 48 * 1024 * 1024         # v7x: 64 MiB per TC -> leave headroom


# --------------------------------------------------------------------------
# Kernel 1: batch-invariant pathway projections + per-node LN2 statistics.
# --------------------------------------------------------------------------
def pathway_proj_kernel(path_ref, wk_ref, bk_ref, wv_ref, bv_ref,
                        kbt_ref, v_ref, muk_ref, msk_ref, *, inv_a):
    path = path_ref[...]                                              # (N_pad, P) f32
    k_base = (jnp.dot(path, wk_ref[...],
                      preferred_element_type=jnp.float32) + bk_ref[...])
    v = (jnp.dot(path, wv_ref[...],
                 preferred_element_type=jnp.float32) + bv_ref[...])

    # Transpose ONCE here so kernel 2's score matmuls contract on the sublane
    # axis of k_baseT (no per-batch-tile relayout).
    k_t = k_base.T                                                    # (A_pad, N_pad) f32
    kbt_ref[...] = k_t.astype(kbt_ref.dtype)                          # compute dtype
    v_ref[...] = v.astype(v_ref.dtype)                                # compute dtype

    # Per-node mean / second moment over the TRUE attn_dim (padded A cols are 0),
    # produced directly in the (1, N_pad) layout kernel 2 consumes.  Kept f32.
    ones = jnp.ones((1, k_t.shape[0]), jnp.float32)
    muk_ref[...] = inv_a * jnp.dot(ones, k_t, preferred_element_type=jnp.float32)
    msk_ref[...] = inv_a * jnp.dot(ones, k_t * k_t,
                                   preferred_element_type=jnp.float32)


# --------------------------------------------------------------------------
# Kernel 2: batch-tiled attention with LayerNorm2 folded into the score.
# --------------------------------------------------------------------------
def cross_modal_kernel(gene_ref, wq_ref, bq_ref, wb_ref, bb_ref,
                       ln1_g_ref, ln1_b_ref, ln2_g_ref, ln2_b_ref,
                       kbt_ref, v_ref, muk_ref, msk_ref, mask_ref,
                       *refs, inv_a, scale, compute_dtype, with_attn, eps=1e-5):
    if with_attn:
        ctx_ref, attn_ref, lhs_ref = refs
    else:
        (ctx_ref, lhs_ref), attn_ref = refs, None

    gene = gene_ref[...]                                              # (TB, G) compute dtype

    # ---- gene-side projections (MXU; operands already compute dtype, f32 acc) ----
    q_raw = (jnp.dot(gene, wq_ref[...],
                     preferred_element_type=jnp.float32) + bq_ref[...])   # (TB, A_pad) f32
    gbias = (jnp.dot(gene, wb_ref[...],
                     preferred_element_type=jnp.float32) + bb_ref[...])   # (TB, A_pad) f32

    # ---- LayerNorm1 over the TRUE attn_dim (padded feature cols are exact 0), f32 VPU ----
    q_mean = jnp.sum(q_raw, axis=-1, keepdims=True) * inv_a
    q_ms = jnp.sum(q_raw * q_raw, axis=-1, keepdims=True) * inv_a
    q_var = jnp.maximum(q_ms - q_mean * q_mean, 0.0)
    q = ((q_raw - q_mean) * jax.lax.rsqrt(q_var + eps)
         * ln1_g_ref[...] + ln1_b_ref[...])

    gamma2 = ln2_g_ref[...]
    beta2 = ln2_b_ref[...]
    qg = q * gamma2                                                   # (TB, A_pad) f32

    # ---- Fused score matmul: [qg ; gbias] @ k_baseT (RHS staged once per tile) ----
    tb = qg.shape[0]
    lhs_ref[:tb, :] = qg.astype(lhs_ref.dtype)
    lhs_ref[tb:, :] = gbias.astype(lhs_ref.dtype)
    both = jnp.dot(lhs_ref[...], kbt_ref[...],
                   preferred_element_type=jnp.float32)                # (2*TB, N_pad) f32
    qk = both[:tb, :]
    cross = both[tb:, :]

    # ---- per-row reductions (padded A cols are exact zeros) ----
    mu_g = jnp.sum(gbias, axis=-1, keepdims=True) * inv_a             # (TB, 1)
    ms_g = jnp.sum(gbias * gbias, axis=-1, keepdims=True) * inv_a     # (TB, 1)
    qgb = jnp.sum(qg * gbias, axis=-1, keepdims=True)                 # (TB, 1)
    sqg = jnp.sum(qg, axis=-1, keepdims=True)                         # (TB, 1)
    qbeta = jnp.sum(q * beta2, axis=-1, keepdims=True)                # (TB, 1)

    # ---- LayerNorm2 statistics of x = k_base + 0.1*gbias (never materialized) ----
    mu = muk_ref[...] + 0.1 * mu_g                                    # (TB, N_pad)
    ex2 = msk_ref[...] + (0.2 * inv_a) * cross + 0.01 * ms_g          # (TB, N_pad)
    var = jnp.maximum(ex2 - mu * mu, 0.0)
    rstd = jax.lax.rsqrt(var + eps)

    # ---- scores + softmax kept in f32 (keeps the -1e30 node mask finite) ----
    scores = scale * (rstd * (qk + 0.1 * qgb - mu * sqg) + qbeta) + mask_ref[...]
    scores = scores - jnp.max(scores, axis=-1, keepdims=True)
    e = jnp.exp(scores)
    weights = e * pl.reciprocal(jnp.sum(e, axis=-1, keepdims=True), approx=True)

    ctx = jnp.dot(weights.astype(compute_dtype), v_ref[...],
                  preferred_element_type=jnp.float32)                 # (TB, A_pad) f32
    ctx_ref[...] = ctx.astype(ctx_ref.dtype)
    if with_attn:
        attn_ref[...] = weights.astype(attn_ref.dtype)


# --------------------------------------------------------------------------
# Batch-invariant preparation: pad + cast params, run kernel 1 once.
# --------------------------------------------------------------------------
def prepare_cross_modal(pathway, params, *, compute_dtype=jnp.bfloat16):
    N, P = pathway.shape
    G, A = params["wq"].shape
    A_pad = _lane_pad(A)
    N_pad = _lane_pad(N)

    path_p = _pad2(pathway.astype(jnp.float32), N_pad, P)
    wk = _pad2(params["wk"], P, A_pad)
    bk = _pad2(params["bk"], 1, A_pad)
    wv = _pad2(params["wv"], P, A_pad)
    bv = _pad2(params["bv"], 1, A_pad)

    vmem = lambda: pl.BlockSpec(memory_space=pltpu.MemorySpace.VMEM)
    k_baseT, v, mu_k, ms_k = pl.pallas_call(
        functools.partial(pathway_proj_kernel, inv_a=1.0 / float(A)),
        out_shape=(
            jax.ShapeDtypeStruct((A_pad, N_pad), compute_dtype),
            jax.ShapeDtypeStruct((N_pad, A_pad), compute_dtype),
            jax.ShapeDtypeStruct((1, N_pad), jnp.float32),
            jax.ShapeDtypeStruct((1, N_pad), jnp.float32),
        ),
        in_specs=[vmem() for _ in range(5)],
        out_specs=(vmem(), vmem(), vmem(), vmem()),
    )(path_p, wk, bk, wv, bv)

    node_mask = jnp.where(jnp.arange(N_pad) < N, 0.0, -1e30
                          ).astype(jnp.float32).reshape(1, N_pad)

    # Casts hoisted to the host: MXU operands in compute dtype, everything
    # feeding f32 VPU math (biases, LN params, stats, mask) stays f32.
    residents = (
        _pad2(params["wq"], G, A_pad, compute_dtype),
        _pad2(params["bq"], 1, A_pad),
        _pad2(params["wb"], G, A_pad, compute_dtype),
        _pad2(params["bb"], 1, A_pad),
        _pad2(params["ln1_g"], 1, A_pad),
        _pad2(params["ln1_b"], 1, A_pad),
        _pad2(params["ln2_g"], 1, A_pad),
        _pad2(params["ln2_b"], 1, A_pad),
        k_baseT, v, mu_k, ms_k, node_mask,
    )
    meta = dict(attn_dim=A, num_nodes=N, a_pad=A_pad, n_pad=N_pad)
    return residents, meta


# --------------------------------------------------------------------------
# Per-batch apply (jitted): kernel 2 over batch tiles.
# --------------------------------------------------------------------------
@functools.partial(
    jax.jit,
    static_argnames=("attn_dim", "num_nodes", "a_pad", "n_pad", "block_b",
                     "compute_dtype", "with_attn", "single_buffer"))
def _cross_modal_apply(gene, residents, *, attn_dim, num_nodes, a_pad, n_pad,
                       block_b, compute_dtype, with_attn, single_buffer):
    B, G = gene.shape
    default_tb, vmem_limit = _default_tile_and_limit()
    if block_b is None:
        block_b = default_tb

    # Sublane-aligned batch tile (16 for 2-byte dtypes so bf16 blocks tile cleanly).
    sub = 8 if jnp.dtype(compute_dtype).itemsize >= 4 else 16
    tb = _round_up(min(block_b, _round_up(B, sub)), sub)
    B_pad = _round_up(B, tb)
    nb = B_pad // tb

    gene_p = _pad2(gene, B_pad, G, compute_dtype)     # cast hoisted out of grid loop

    inv_a = 1.0 / float(attn_dim)
    scale = 1.0 / float(attn_dim) ** 0.5

    if single_buffer:
        # Constant-index residents never change across grid steps: single-buffer
        # them so v7x's 64 MiB/TC isn't spent on dead double buffers.
        res_spec = lambda arr: pl.BlockSpec(arr.shape, lambda i: (0, 0),
                                            pipeline_mode=pl.Buffered(1))
    else:
        res_spec = lambda arr: pl.BlockSpec(arr.shape, lambda i: (0, 0))

    ctx_sds = jax.ShapeDtypeStruct((B_pad, a_pad), jnp.float32)
    ctx_spec = pl.BlockSpec((tb, a_pad), lambda i: (i, 0))
    if with_attn:
        out_shape = (ctx_sds, jax.ShapeDtypeStruct((B_pad, n_pad), jnp.float32))
        out_specs = (ctx_spec, pl.BlockSpec((tb, n_pad), lambda i: (i, 0)))
    else:
        out_shape = ctx_sds
        out_specs = ctx_spec

    itemsize = jnp.dtype(compute_dtype).itemsize
    flops = (4 * B_pad * G * a_pad            # q / gbias projections
             + 4 * B_pad * a_pad * n_pad      # fused qk / cross matmul
             + 2 * B_pad * n_pad * a_pad)     # context matmul
    bytes_accessed = (B_pad * G * itemsize
                      + 2 * n_pad * a_pad * itemsize
                      + 2 * G * a_pad * itemsize
                      + 4 * (10 * a_pad + 3 * n_pad)
                      + 4 * B_pad * a_pad
                      + (4 * B_pad * n_pad if with_attn else 0))
    cost = pl.CostEstimate(flops=int(flops),
                           transcendentals=int(3 * B_pad * n_pad),
                           bytes_accessed=int(bytes_accessed))

    outs = pl.pallas_call(
        functools.partial(cross_modal_kernel, inv_a=inv_a, scale=scale,
                          compute_dtype=compute_dtype, with_attn=with_attn),
        grid=(nb,),
        out_shape=out_shape,
        in_specs=[pl.BlockSpec((tb, G), lambda i: (i, 0))]
                 + [res_spec(a) for a in residents],
        out_specs=out_specs,
        scratch_shapes=[pltpu.VMEM((2 * tb, a_pad), compute_dtype)],
        compiler_params=pltpu.CompilerParams(
            dimension_semantics=("parallel",),        # megacore sharding on v7x
            vmem_limit_bytes=vmem_limit,              # per-generation headroom
        ),
        cost_estimate=cost,
    )(gene_p, *residents)

    if with_attn:
        ctx_p, attn_p = outs
        return ctx_p[:B, :attn_dim], attn_p[:B, :num_nodes]
    return outs[:B, :attn_dim]


_SINGLE_BUFFER_RESIDENTS = True   # flipped off automatically if pl.Buffered(1) is unsupported


def cross_modal_attention_prepared(gene, residents, meta, *, block_b=None,
                                   compute_dtype=jnp.bfloat16,
                                   return_attn_weights=True):
    global _SINGLE_BUFFER_RESIDENTS
    kwargs = dict(attn_dim=meta["attn_dim"], num_nodes=meta["num_nodes"],
                  a_pad=meta["a_pad"], n_pad=meta["n_pad"],
                  block_b=block_b, compute_dtype=compute_dtype,
                  with_attn=return_attn_weights)
    if _SINGLE_BUFFER_RESIDENTS:
        try:
            return _cross_modal_apply(gene, residents, single_buffer=True, **kwargs)
        except Exception:
            # pipeline_mode=pl.Buffered(1) not supported by this jax/libtpu:
            # fall back to default buffering (correctness unaffected).
            _SINGLE_BUFFER_RESIDENTS = False
    return _cross_modal_apply(gene, residents, single_buffer=False, **kwargs)


def cross_modal_attention(gene, pathway, params, *, block_b=None,
                          compute_dtype=jnp.bfloat16, return_attn_weights=True):
    """One-shot convenience wrapper. For repeated calls with the same pathway /
    params, call prepare_cross_modal() once and reuse its result with
    cross_modal_attention_prepared()."""
    residents, meta = prepare_cross_modal(pathway, params,
                                          compute_dtype=compute_dtype)
    return cross_modal_attention_prepared(
        gene, residents, meta, block_b=block_b, compute_dtype=compute_dtype,
        return_attn_weights=return_attn_weights)


# --------------------------------------------------------------------------
# Parameter init mirroring the PyTorch module + pure-JAX reference.
# --------------------------------------------------------------------------
def init_params(key, gene_dim, pathway_dim, attn_dim):
    ks = jax.random.split(key, 8)

    def xavier_normal(k, fan_in, fan_out):
        std = (2.0 / (fan_in + fan_out)) ** 0.5
        return std * jax.random.normal(k, (fan_in, fan_out), dtype=jnp.float32)

    def linear_default(k, fan_in, fan_out):
        bound = 1.0 / (fan_in ** 0.5)
        return jax.random.uniform(k, (fan_in, fan_out), dtype=jnp.float32,
                                  minval=-bound, maxval=bound)

    def bias_default(k, fan_in, fan_out):
        bound = 1.0 / (fan_in ** 0.5)
        return jax.random.uniform(k, (1, fan_out), dtype=jnp.float32,
                                  minval=-bound, maxval=bound)

    return dict(
        wq=xavier_normal(ks[0], gene_dim, attn_dim),
        bq=bias_default(ks[1], gene_dim, attn_dim),
        wk=xavier_normal(ks[2], pathway_dim, attn_dim),
        bk=bias_default(ks[3], pathway_dim, attn_dim),
        wv=linear_default(ks[4], pathway_dim, attn_dim),
        bv=bias_default(ks[5], pathway_dim, attn_dim),
        wb=linear_default(ks[6], gene_dim, attn_dim),
        bb=bias_default(ks[7], gene_dim, attn_dim),
        ln1_g=jnp.ones((1, attn_dim), jnp.float32),
        ln1_b=jnp.zeros((1, attn_dim), jnp.float32),
        ln2_g=jnp.ones((1, attn_dim), jnp.float32),
        ln2_b=jnp.zeros((1, attn_dim), jnp.float32),
    )


def reference_forward(gene, pathway, p):
    # Pure-JAX reference mirroring the PyTorch eval-mode forward.
    def ln(x, g, b, eps=1e-5):
        m = jnp.mean(x, -1, keepdims=True)
        v = jnp.mean((x - m) ** 2, -1, keepdims=True)
        return (x - m) / jnp.sqrt(v + eps) * g + b

    A = p["wq"].shape[1]
    q = ln(gene @ p["wq"] + p["bq"], p["ln1_g"], p["ln1_b"])
    gbias = gene @ p["wb"] + p["bb"]
    k_base = pathway @ p["wk"] + p["bk"]
    v = pathway @ p["wv"] + p["bv"]
    k = ln(k_base[None] + 0.1 * gbias[:, None, :], p["ln2_g"], p["ln2_b"])
    s = jnp.sum(q[:, None, :] * k, -1) / (A ** 0.5)
    w = jax.nn.softmax(s, axis=-1)
    return w @ v, w


if __name__ == "__main__":
    B, gene_dim, pathway_dim, attn_dim, num_nodes = 2, 32, 16, 32, 8

    key = jax.random.PRNGKey(0)
    k_gene, k_path, k_params = jax.random.split(key, 3)

    gene_embedding = jax.random.normal(k_gene, (B, gene_dim), dtype=jnp.float32)
    pathway_node_features = jax.random.normal(
        k_path, (num_nodes, pathway_dim), dtype=jnp.float32)
    params = init_params(k_params, gene_dim, pathway_dim, attn_dim)

    ref_ctx, ref_w = reference_forward(gene_embedding, pathway_node_features, params)

    # f32 MXU operands: tight check of the folded-LayerNorm2 algorithm.
    ctx32, w32 = cross_modal_attention(gene_embedding, pathway_node_features,
                                       params, compute_dtype=jnp.float32)
    jax.block_until_ready((ctx32, w32))
    assert ctx32.shape == (B, attn_dim) and w32.shape == (B, num_nodes)
    assert jnp.allclose(ctx32, ref_ctx, atol=2e-3, rtol=2e-3), \
        float(jnp.max(jnp.abs(ctx32 - ref_ctx)))
    assert jnp.allclose(w32, ref_w, atol=1e-3, rtol=1e-3), \
        float(jnp.max(jnp.abs(w32 - ref_w)))

    # Default path: bf16 MXU operands (f32 accumulation / LN / softmax) -> looser tol.
    ctx_bf, w_bf = cross_modal_attention(gene_embedding, pathway_node_features, params)
    jax.block_until_ready((ctx_bf, w_bf))
    assert ctx_bf.shape == (B, attn_dim) and w_bf.shape == (B, num_nodes)
    assert jnp.allclose(ctx_bf, ref_ctx, atol=5e-2, rtol=5e-2), \
        float(jnp.max(jnp.abs(ctx_bf - ref_ctx)))
    assert jnp.allclose(w_bf, ref_w, atol=3e-2, rtol=3e-2), \
        float(jnp.max(jnp.abs(w_bf - ref_w)))

    # Context-only path (attention weights neither computed as output nor stored).
    ctx_only = cross_modal_attention(gene_embedding, pathway_node_features, params,
                                     return_attn_weights=False)
    jax.block_until_ready(ctx_only)
    assert ctx_only.shape == (B, attn_dim)
    assert jnp.allclose(ctx_only, ref_ctx, atol=5e-2, rtol=5e-2), \
        float(jnp.max(jnp.abs(ctx_only - ref_ctx)))

    print("KERNEL_OK")
</pallas_src>

<mosaic_0001>
module attributes {stable_mosaic.version = 11 : i64} {
  func.func @pathway_proj_kernel(%arg0: memref<128x16xf32, #tpu.memory_space<vmem>>, %arg1: memref<16x128xf32, #tpu.memory_space<vmem>>, %arg2: memref<1x128xf32, #tpu.memory_space<vmem>>, %arg3: memref<16x128xf32, #tpu.memory_space<vmem>>, %arg4: memref<1x128xf32, #tpu.memory_space<vmem>>, %arg5: memref<128x128xf32, #tpu.memory_space<vmem>>, %arg6: memref<128x128xf32, #tpu.memory_space<vmem>>, %arg7: memref<1x128xf32, #tpu.memory_space<vmem>>, %arg8: memref<1x128xf32, #tpu.memory_space<vmem>>) attributes {dimension_semantics = [], scalar_prefetch = 0 : i64, scratch_operands = 0 : i64, tpu.core_type = #tpu.core_type<tc>} {
    %c0 = arith.constant 0 : index
    %c0_0 = arith.constant 0 : index
    %0 = vector.load %arg0[%c0, %c0_0] : memref<128x16xf32, #tpu.memory_space<vmem>>, vector<128x16xf32>
    %c0_1 = arith.constant 0 : index
    %c0_2 = arith.constant 0 : index
    %1 = vector.load %arg1[%c0_1, %c0_2] : memref<16x128xf32, #tpu.memory_space<vmem>>, vector<16x128xf32>
    %cst = arith.constant dense<0.000000e+00> : vector<128x128xf32>
    %2 = tpu.matmul %0, %1, %cst {dimension_numbers = #tpu.dot_dimension_numbers<[1], [0], [0], [1], [0, 0, 1, 1], [], []>} : vector<128x16xf32>, vector<16x128xf32>, vector<128x128xf32> -> vector<128x128xf32>
    %c0_3 = arith.constant 0 : index
    %c0_4 = arith.constant 0 : index
    %3 = vector.load %arg2[%c0_3, %c0_4] : memref<1x128xf32, #tpu.memory_space<vmem>>, vector<1x128xf32>
    %4 = vector.broadcast %3 : vector<1x128xf32> to vector<128x128xf32>
    %5 = arith.addf %2, %4 : vector<128x128xf32>
    %c0_5 = arith.constant 0 : index
    %c0_6 = arith.constant 0 : index
    %6 = vector.load %arg3[%c0_5, %c0_6] : memref<16x128xf32, #tpu.memory_space<vmem>>, vector<16x128xf32>
    %cst_7 = arith.constant dense<0.000000e+00> : vector<128x128xf32>
    %7 = tpu.matmul %0, %6, %cst_7 {dimension_numbers = #tpu.dot_dimension_numbers<[1], [0], [0], [1], [0, 0, 1, 1], [], []>} : vector<128x16xf32>, vector<16x128xf32>, vector<128x128xf32> -> vector<128x128xf32>
    %c0_8 = arith.constant 0 : index
    %c0_9 = arith.constant 0 : index
    %8 = vector.load %arg4[%c0_8, %c0_9] : memref<1x128xf32, #tpu.memory_space<vmem>>, vector<1x128xf32>
    %9 = vector.broadcast %8 : vector<1x128xf32> to vector<128x128xf32>
    %10 = arith.addf %7, %9 : vector<128x128xf32>
    %11 = tpu.transpose %5, [1, 0] : vector<128x128xf32> -> vector<128x128xf32>
    %c0_10 = arith.constant 0 : index
    %c0_11 = arith.constant 0 : index
    %12 = vector.load %arg5[%c0_10, %c0_11] : memref<128x128xf32, #tpu.memory_space<vmem>>, vector<128x128xf32>
    tpu.vector_store %arg5[%c0_10, %c0_11], %11 {strides = array<i32>} : memref<128x128xf32, #tpu.memory_space<vmem>>, vector<128x128xf32>,
    %c0_12 = arith.constant 0 : index
    %c0_13 = arith.constant 0 : index
    %13 = vector.load %arg6[%c0_12, %c0_13] : memref<128x128xf32, #tpu.memory_space<vmem>>, vector<128x128xf32>
    tpu.vector_store %arg6[%c0_12, %c0_13], %10 {strides = array<i32>} : memref<128x128xf32, #tpu.memory_space<vmem>>, vector<128x128xf32>,
    %cst_14 = arith.constant 1.000000e+00 : f32
    %14 = vector.broadcast %cst_14 : f32 to vector<1x128xf32>
    %cst_15 = arith.constant dense<0.000000e+00> : vector<1x128xf32>
    %15 = tpu.matmul %14, %11, %cst_15 {dimension_numbers = #tpu.dot_dimension_numbers<[1], [0], [0], [1], [0, 0, 1, 1], [], []>} : vector<1x128xf32>, vector<128x128xf32>, vector<1x128xf32> -> vector<1x128xf32>
    %cst_16 = arith.constant 3.125000e-02 : f32
    %16 = vector.broadcast %cst_16 : f32 to vector<1x128xf32>
    %17 = arith.mulf %16, %15 : vector<1x128xf32>
    %c0_17 = arith.constant 0 : index
    %c0_18 = arith.constant 0 : index
    %18 = vector.load %arg7[%c0_17, %c0_18] : memref<1x128xf32, #tpu.memory_space<vmem>>, vector<1x128xf32>
    tpu.vector_store %arg7[%c0_17, %c0_18], %17 {strides = array<i32>} : memref<1x128xf32, #tpu.memory_space<vmem>>, vector<1x128xf32>,
    %19 = arith.mulf %11, %11 : vector<128x128xf32>
    %cst_19 = arith.constant dense<0.000000e+00> : vector<1x128xf32>
    %20 = tpu.matmul %14, %19, %cst_19 {dimension_numbers = #tpu.dot_dimension_numbers<[1], [0], [0], [1], [0, 0, 1, 1], [], []>} : vector<1x128xf32>, vector<128x128xf32>, vector<1x128xf32> -> vector<1x128xf32>
    %cst_20 = arith.constant 3.125000e-02 : f32
    %21 = vector.broadcast %cst_20 : f32 to vector<1x128xf32>
    %22 = arith.mulf %21, %20 : vector<1x128xf32>
    %c0_21 = arith.constant 0 : index
    %c0_22 = arith.constant 0 : index
    %23 = vector.load %arg8[%c0_21, %c0_22] : memref<1x128xf32, #tpu.memory_space<vmem>>, vector<1x128xf32>
    tpu.vector_store %arg8[%c0_21, %c0_22], %22 {strides = array<i32>} : memref<1x128xf32, #tpu.memory_space<vmem>>, vector<1x128xf32>,
    return
  }
}

</mosaic_0001>

<bundles_post_ra>
// kernel: tpu_custom_call.1
= control target key start
LH: loop header
LB: loop body
LE: loop exit
PB: predicated region body
PF: predicated region fallthrough
CT: control target
= control target key end

     0   :  { %14 = vsyncpa [#allocation3], 0  ;;  %s852_s0 = inlined_call_operand.vmem [shape: f32[128,16], index: 0, kind: input, shape index: {}]   ;;  %s853_s1 = inlined_call_operand.vmem [shape: f32[16,128], index: 1, kind: input, shape index: {}]   ;;  %s854_s2 = inlined_call_operand.vmem [shape: f32[1,128], index: 2, kind: input, shape index: {}]   ;;  %s855_s3 = inlined_call_operand.vmem [shape: f32[16,128], index: 3, kind: input, shape index: {}]   ;;  %s856_s4 = inlined_call_operand.vmem [shape: f32[1,128], index: 4, kind: input, shape index: {}]   ;;  %s857_s5 = inlined_call_operand.hbm [shape: f32[128,128], index: 5, kind: output, shape index: {0}]   ;;  %s858_s6 = inlined_call_operand.hbm [shape: f32[128,128], index: 6, kind: output, shape index: {1}]   ;;  %s859_s7 = inlined_call_operand.hbm [shape: f32[1,128], index: 7, kind: output, shape index: {2}]   ;;  %s860_s8 = inlined_call_operand.hbm [shape: f32[1,128], index: 8, kind: output, shape index: {3}]  }
   0x1   :  { %15 = vsyncpa [#allocation5], 0  ;;  %v44_v0 = vld [vmem:[%s853_s1 + $0x8] sm:$0xff]  ;;  %v43_v1 = vld [vmem:[%s853_s1] sm:$0xff]  ;;  %vm49_vm0 = vcmask 130048  }
   0x2   :  { %112 = vmatpush.msra.mxu0 %v44_v0  ;;  %v633_v2 = vld [vmem:[%s852_s0] sm:$0xff]  ;;  %457 = vmatpush.msra.mxu2 %v44_v0 }
   0x4   :  { %113 = vmatpush.msra.mxu0 %v43_v1  ;;  %458 = vmatpush.msra.mxu2 %v43_v1 }
   0x5   :  { %16 = vsyncpa [#allocation8], 0  ;;  %425 = vmatmul.msk.f32.vlgmr.msra.gmra.mxu0 %vm49_vm0, %v633_v2  ;;  %v640_v3 = vld [vmem:[%s852_s0 + $0x8] sm:$0xff]  ;;  %v647_v4 = vld [vmem:[%s852_s0 + $0x10] sm:$0xff]  ;;  %s364_s22 = sshll.u32 %s857_s5, 4  ;;  %s573_s23 = smov [#allocation2]   ;;  %s365_s22 = int_to_ptr.hbm [resolvable:$true] %s364_s22 }
   0x6   :  { %v654_v5 = vld [vmem:[%s852_s0 + $0x18] sm:$0xff]  ;;  %v661_v6 = vld [vmem:[%s852_s0 + $0x20] sm:$0xff]  ;;  %v668_v7 = vld [vmem:[%s852_s0 + $0x28] sm:$0xff]  ;;  %s362_s24 = sshll.u32 %s573_s23, 4  ;;  %s574_s25 = smov 128   ;;  %s363_s24 = int_to_ptr.vmem [resolvable:$true] %s362_s24 }
   0x7   :  { %v675_v8 = vld [vmem:[%s852_s0 + $0x50] sm:$0xff]  ;;  %v687_v10 = vld [vmem:[%s852_s0 + $0x58] sm:$0xff]  ;;  %v701_v12 = vld [vmem:[%s852_s0 + $0x60] sm:$0xff]  ;;  %s575_s26 = smov 8   ;;  %s377_s9 = sshll.u32 %s858_s6, 4  ;;  %s378_s9 = int_to_ptr.hbm [resolvable:$true] %s377_s9 }
   0x8   :  { %435 = vmatmul.msk.f32.vlgmr.msra.gmra.mxu2 %vm49_vm0, %v675_v8  ;;  %v682_v9 = vld [vmem:[%s852_s0 + $0x30] sm:$0xff]  ;;  %v696_v11 = vld [vmem:[%s852_s0 + $0x38] sm:$0xff]  ;;  %v710_v13 = vld [vmem:[%s852_s0 + $0x40] sm:$0xff]  ;;  %s577_s10 = smov [#allocation6]   ;;  %s391_s13 = sshll.u32 %s859_s7, 4  ;;  %s392_s13 = int_to_ptr.hbm [resolvable:$true] %s391_s13 }
   0x9   :  { %v715_v14 = vld [vmem:[%s852_s0 + $0x68] sm:$0xff]  ;;  %v729_v16 = vld [vmem:[%s852_s0 + $0x70] sm:$0xff]  ;;  %v738_v17 = vld [vmem:[%s852_s0 + $0x78] sm:$0xff]  ;;  %s389_s11 = sshll.u32 %s577_s10, 4  ;;  %s578_s14 = smov [#allocation7]   ;;  %s390_s11 = int_to_ptr.vmem [resolvable:$true] %s389_s11 }
   0xa   :  { %v724_v15 = vld [vmem:[%s852_s0 + $0x48] sm:$0xff]  ;;  %v468_v18 = vld [vmem:[%s854_s2] ss:$0 sm:$0xff]  ;;  %s400_s15 = sshll.u32 %s578_s14, 4  ;;  %s402_s17 = sshll.u32 %s860_s8, 4  ;;  %s401_s15 = int_to_ptr.vmem [resolvable:$true] %s400_s15  ;;  %s403_s17 = int_to_ptr.hbm [resolvable:$true] %s402_s17 }
   0xb   :  { %v164_v59 = vld [vmem:[%s855_s3 + $0x8] sm:$0xff]  ;;  %v163_v60 = vld [vmem:[%s855_s3] sm:$0xff] }
   0xc   :  { %183 = vmatpush.msra.mxu1 %v164_v59  ;;  %459 = vmatpush.msra.mxu3 %v164_v59 }
   0xd   :  { %426 = vmatmul.msk.f32.gmra.mxu0 %vm49_vm0, %v640_v3 }
   0xe   :  { %184 = vmatpush.msra.mxu1 %v163_v60  ;;  %460 = vmatpush.msra.mxu3 %v163_v60 }
   0xf   :  { %441 = vmatmul.msk.f32.vlgmr.msra.gmra.mxu1 %vm49_vm0, %v633_v2  ;;  %450 = vmatmul.msk.f32.vlgmr.msra.gmra.mxu3 %vm49_vm0, %v724_v15 }
  0x10   :  { %436 = vmatmul.msk.f32.gmra.mxu2 %vm49_vm0, %v687_v10 }
  0x15   :  { %427 = vmatmul.msk.f32.gmra.mxu0 %vm49_vm0, %v647_v4 }
  0x17   :  { %442 = vmatmul.msk.f32.gmra.mxu1 %vm49_vm0, %v640_v3  ;;  %451 = vmatmul.msk.f32.gmra.mxu3 %vm49_vm0, %v675_v8 }
  0x18   :  { %437 = vmatmul.msk.f32.gmra.mxu2 %vm49_vm0, %v701_v12 }
  0x1d   :  { %428 = vmatmul.msk.f32.gmra.mxu0 %vm49_vm0, %v654_v5 }
  0x1f   :  { %443 = vmatmul.msk.f32.gmra.mxu1 %vm49_vm0, %v647_v4  ;;  %452 = vmatmul.msk.f32.gmra.mxu3 %vm49_vm0, %v687_v10 }
  0x20   :  { %438 = vmatmul.msk.f32.gmra.mxu2 %vm49_vm0, %v715_v14 }
  0x25   :  { %429 = vmatmul.msk.f32.gmra.mxu0 %vm49_vm0, %v661_v6 }
  0x27   :  { %444 = vmatmul.msk.f32.gmra.mxu1 %vm49_vm0, %v654_v5  ;;  %453 = vmatmul.msk.f32.gmra.mxu3 %vm49_vm0, %v701_v12 }
  0x28   :  { %439 = vmatmul.msk.f32.gmra.mxu2 %vm49_vm0, %v729_v16 }
  0x2d   :  { %430 = vmatmul.msk.f32.gmra.mxu0 %vm49_vm0, %v668_v7 }
  0x2f   :  { %445 = vmatmul.msk.f32.gmra.mxu1 %vm49_vm0, %v661_v6  ;;  %454 = vmatmul.msk.f32.gmra.mxu3 %vm49_vm0, %v715_v14 }
  0x30   :  { %440 = vmatmul.msk.f32.gmra.mxu2 %vm49_vm0, %v738_v17 }
  0x35   :  { %431 = vmatmul.msk.f32.gmra.mxu0 %vm49_vm0, %v682_v9 }
  0x37   :  { %446 = vmatmul.msk.f32.gmra.mxu1 %vm49_vm0, %v668_v7  ;;  %455 = vmatmul.msk.f32.gmra.mxu3 %vm49_vm0, %v729_v16 }
  0x3d   :  { %432 = vmatmul.msk.f32.gmra.mxu0 %vm49_vm0, %v696_v11 }
  0x3f   :  { %447 = vmatmul.msk.f32.gmra.mxu1 %vm49_vm0, %v682_v9  ;;  %456 = vmatmul.msk.f32.gmra.mxu3 %vm49_vm0, %v738_v17 }
  0x45   :  { %433 = vmatmul.msk.f32.gmra.mxu0 %vm49_vm0, %v710_v13 }
  0x47   :  { %448 = vmatmul.msk.f32.gmra.mxu1 %vm49_vm0, %v696_v11 }
  0x4d   :  { %434 = vmatmul.msk.f32.gmra.mxu0 %vm49_vm0, %v724_v15 }
  0x4f   :  { %449 = vmatmul.msk.f32.gmra.mxu1 %vm49_vm0, %v710_v13 }
  0x82   :  { %v115_v19 = vpop.f32.mrf.mxu0 }
  0x83   :  { %v116_v20 = vadd.f32 %v468_v18, %v115_v19 }
  0x85   :  { %234 = vxpose.xlu0.b32.start [1/16] %v116_v20, 128 }
  0x8a   :  { %v118_v21 = vpop.f32.mrf.mxu0 }
  0x8b   :  { %v119_v22 = vadd.f32 %v468_v18, %v118_v21  ;;  %v145_v37 = vpop.f32.mrf.mxu2  ;;  %v572_v21 = vmov 1.0  }
  0x8c   :  { %v146_v41 = vadd.f32 %v468_v18, %v145_v37 }
  0x8d   :  { %235 = vxpose.xlu0.b32.cont [2/16] %v119_v22, 128  ;;  %v469_v22 = vld [vmem:[%s856_s4] ss:$0 sm:$0xff]  ;;  %s576_s4 = smov [#allocation4]  }
  0x8e   :  { %s375_s5 = sshll.u32 %s576_s4, 4  ;;  %s376_s5 = int_to_ptr.vmem [resolvable:$true] %s375_s5 }
  0x92   :  { %v121_v23 = vpop.f32.mrf.mxu0 }
  0x93   :  { %v122_v24 = vadd.f32 %v468_v18, %v121_v23  ;;  %v148_v40 = vpop.f32.mrf.mxu2  ;;  %v186_v23 = vpop.f32.mrf.mxu1 }
  0x94   :  { %v149_v43 = vadd.f32 %v468_v18, %v148_v40 }
  0x95   :  { %236 = vxpose.xlu0.b32.cont [3/16] %v122_v24, 128  ;;  %v187_v24 = vadd.f32 %v469_v22, %v186_v23 }
  0x97   :  { %282 = vst [vmem:[#allocation4] sm:$0xff] %v187_v24 }
  0x9a   :  { %v124_v25 = vpop.f32.mrf.mxu0 }
  0x9b   :  { %v125_v26 = vadd.f32 %v468_v18, %v124_v25  ;;  %v151_v42 = vpop.f32.mrf.mxu2  ;;  %v213_v25 = vpop.f32.mrf.mxu3 }
  0x9c   :  { %v152_v44 = vadd.f32 %v468_v18, %v151_v42 }
  0x9d   :  { %237 = vxpose.xlu0.b32.cont [4/16] %v125_v26, 128  ;;  %v214_v26 = vadd.f32 %v469_v22, %v213_v25 }
  0x9f   :  { %291 = vst [vmem:[#allocation4 + $0x48] sm:$0xff] %v214_v26 }
  0xa2   :  { %v127_v27 = vpop.f32.mrf.mxu0 }
  0xa3   :  { %v128_v28 = vadd.f32 %v468_v18, %v127_v27  ;;  %v154_v45 = vpop.f32.mrf.mxu2  ;;  %v189_v27 = vpop.f32.mrf.mxu1 }
  0xa4   :  { %v155_v46 = vadd.f32 %v468_v18, %v154_v45 }
  0xa5   :  { %238 = vxpose.xlu0.b32.cont [5/16] %v128_v28, 128  ;;  %v190_v28 = vadd.f32 %v469_v22, %v189_v27 }
  0xa7   :  { %283 = vst [vmem:[#allocation4 + $0x8] sm:$0xff] %v190_v28 }
  0xaa   :  { %v130_v29 = vpop.f32.mrf.mxu0 }
  0xab   :  { %v131_v30 = vadd.f32 %v468_v18, %v130_v29  ;;  %v157_v47 = vpop.f32.mrf.mxu2  ;;  %v216_v29 = vpop.f32.mrf.mxu3 }
  0xac   :  { %v158_v48 = vadd.f32 %v468_v18, %v157_v47 }
  0xad   :  { %239 = vxpose.xlu0.b32.cont [6/16] %v131_v30, 128  ;;  %v217_v30 = vadd.f32 %v469_v22, %v216_v29 }
  0xaf   :  { %292 = vst [vmem:[#allocation4 + $0x50] sm:$0xff] %v217_v30 }
  0xb2   :  { %v133_v31 = vpop.f32.mrf.mxu0 }
  0xb3   :  { %v134_v32 = vadd.f32 %v468_v18, %v133_v31  ;;  %v160_v49 = vpop.f32.mrf.mxu2  ;;  %v192_v31 = vpop.f32.mrf.mxu1 }
  0xb4   :  { %v161_v50 = vadd.f32 %v468_v18, %v160_v49 }
  0xb5   :  { %240 = vxpose.xlu0.b32.cont [7/16] %v134_v32, 128  ;;  %v193_v32 = vadd.f32 %v469_v22, %v192_v31 }
  0xb7   :  { %284 = vst [vmem:[#allocation4 + $0x10] sm:$0xff] %v193_v32 }
  0xba   :  { %v136_v33 = vpop.f32.mrf.mxu0 }
  0xbb   :  { %v137_v34 = vadd.f32 %v468_v18, %v136_v33  ;;  %v219_v33 = vpop.f32.mrf.mxu3 }
  0xbd   :  { %241 = vxpose.xlu0.b32.cont [8/16] %v137_v34, 128  ;;  %v220_v34 = vadd.f32 %v469_v22, %v219_v33 }
  0xbf   :  { %293 = vst [vmem:[#allocation4 + $0x58] sm:$0xff] %v220_v34 }
  0xc2   :  { %v139_v35 = vpop.f32.mrf.mxu0 }
  0xc3   :  { %v140_v36 = vadd.f32 %v468_v18, %v139_v35  ;;  %v195_v35 = vpop.f32.mrf.mxu1  ;;  %v222_v37 = vpop.f32.mrf.mxu3 }
  0xc5   :  { %242 = vxpose.xlu0.b32.cont [9/16] %v140_v36, 128  ;;  %v196_v36 = vadd.f32 %v469_v22, %v195_v35 }
  0xc7   :  { %285 = vst [vmem:[#allocation4 + $0x18] sm:$0xff] %v196_v36 }
  0xca   :  { %v142_v38 = vpop.f32.mrf.mxu0 }
  0xcb   :  { %v143_v39 = vadd.f32 %v468_v18, %v142_v38  ;;  %v223_v38 = vadd.f32 %v469_v22, %v222_v37 }
  0xcd   :  { %243 = vxpose.xlu0.b32.cont [10/16] %v143_v39, 128  ;;  %v198_v39 = vpop.f32.mrf.mxu1  ;;  %294 = vst [vmem:[#allocation4 + $0x60] sm:$0xff] %v223_v38 }
  0xce   :  { %v199_v40 = vadd.f32 %v469_v22, %v198_v39 }
  0xd0   :  { %286 = vst [vmem:[#allocation4 + $0x20] sm:$0xff] %v199_v40 }
  0xd5   :  { %244 = vxpose.xlu0.b32.cont [11/16] %v146_v41, 128  ;;  %v225_v41 = vpop.f32.mrf.mxu3 }
  0xd6   :  { %v226_v42 = vadd.f32 %v469_v22, %v225_v41 }
  0xd8   :  { %295 = vst [vmem:[#allocation4 + $0x68] sm:$0xff] %v226_v42 }
  0xdd   :  { %245 = vxpose.xlu0.b32.cont [12/16] %v149_v43, 128  ;;  %v201_v43 = vpop.f32.mrf.mxu1  ;;  %v228_v45 = vpop.f32.mrf.mxu3 }
  0xe5   :  { %246 = vxpose.xlu0.b32.cont [13/16] %v152_v44, 128  ;;  %v202_v44 = vadd.f32 %v469_v22, %v201_v43  ;;  %v204_v47 = vpop.f32.mrf.mxu1  ;;  %v231_v49 = vpop.f32.mrf.mxu3 }
  0xe7   :  { %287 = vst [vmem:[#allocation4 + $0x28] sm:$0xff] %v202_v44 }
  0xed   :  { %247 = vxpose.xlu0.b32.cont [14/16] %v155_v46, 128  ;;  %v229_v46 = vadd.f32 %v469_v22, %v228_v45 }
  0xef   :  { %296 = vst [vmem:[#allocation4 + $0x70] sm:$0xff] %v229_v46 }
  0xf5   :  { %248 = vxpose.xlu0.b32.cont [15/16] %v158_v48, 128  ;;  %v205_v48 = vadd.f32 %v469_v22, %v204_v47 }
  0xf7   :  { %288 = vst [vmem:[#allocation4 + $0x30] sm:$0xff] %v205_v48 }
  0xfd   :  { %249 = vxpose.xlu0.b32.end [16/16] %v161_v50, 128  ;;  %v232_v50 = vadd.f32 %v469_v22, %v231_v49 }
  0xff   :  { %297 = vst [vmem:[#allocation4 + $0x78] sm:$0xff] %v232_v50 }
 0x129   :  { %v745_v51 = vpop.trf.xlu0 }
 0x12a   :  { %266 = vst [vmem:[#allocation2] sm:$0xff] %v745_v51  ;;  %v320_v20 = vmul.f32 %v745_v51, %v745_v51 }
 0x131   :  { %v748_v52 = vpop.trf.xlu0 }
 0x132   :  { %267 = vst [vmem:[#allocation2 + $0x8] sm:$0xff] %v748_v52  ;;  %v321_v19 = vmul.f32 %v748_v52, %v748_v52 }
 0x139   :  { %v751_v53 = vpop.trf.xlu0 }
 0x13a   :  { %268 = vst [vmem:[#allocation2 + $0x10] sm:$0xff] %v751_v53  ;;  %v322_v18 = vmul.f32 %v751_v53, %v751_v53 }
 0x141   :  { %v754_v54 = vpop.trf.xlu0 }
 0x142   :  { %269 = vst [vmem:[#allocation2 + $0x18] sm:$0xff] %v754_v54  ;;  %v323_v17 = vmul.f32 %v754_v54, %v754_v54 }
 0x149   :  { %v757_v55 = vpop.trf.xlu0 }
 0x14a   :  { %270 = vst [vmem:[#allocation2 + $0x20] sm:$0xff] %v757_v55  ;;  %v324_v16 = vmul.f32 %v757_v55, %v757_v55 }
 0x151   :  { %v760_v56 = vpop.trf.xlu0 }
 0x152   :  { %271 = vst [vmem:[#allocation2 + $0x28] sm:$0xff] %v760_v56  ;;  %v325_v15 = vmul.f32 %v760_v56, %v760_v56 }
 0x159   :  { %v763_v57 = vpop.trf.xlu0 }
 0x15a   :  { %272 = vst [vmem:[#allocation2 + $0x30] sm:$0xff] %v763_v57  ;;  %v326_v13 = vmul.f32 %v763_v57, %v763_v57 }
 0x161   :  { %v766_v58 = vpop.trf.xlu0 }
 0x162   :  { %273 = vst [vmem:[#allocation2 + $0x38] sm:$0xff] %v766_v58  ;;  %v327_v14 = vmul.f32 %v766_v58, %v766_v58 }
 0x169   :  { %v258_v61 = vpop.trf.xlu0 }
 0x16a   :  { %274 = vst [vmem:[#allocation2 + $0x40] sm:$0xff] %v258_v61  ;;  %v328_v12 = vmul.f32 %v258_v61, %v258_v61 }
 0x171   :  { %v259_v62 = vpop.trf.xlu0 }
 0x172   :  { %275 = vst [vmem:[#allocation2 + $0x48] sm:$0xff] %v259_v62  ;;  %v329_v11 = vmul.f32 %v259_v62, %v259_v62 }
 0x179   :  { %v260_v63 = vpop.trf.xlu0 }
 0x17a   :  { %276 = vst [vmem:[#allocation2 + $0x50] sm:$0xff] %v260_v63  ;;  %v330_v10 = vmul.f32 %v260_v63, %v260_v63 }
 0x181   :  { %v261_v0 = vpop.trf.xlu0 }
 0x182   :  { %277 = vst [vmem:[#allocation2 + $0x58] sm:$0xff] %v261_v0  ;;  %v331_v9 = vmul.f32 %v261_v0, %v261_v0 }
 0x189   :  { %v262_v1 = vpop.trf.xlu0 }
 0x18a   :  { %278 = vst [vmem:[#allocation2 + $0x60] sm:$0xff] %v262_v1  ;;  %v332_v8 = vmul.f32 %v262_v1, %v262_v1 }
 0x191   :  { %v263_v2 = vpop.trf.xlu0 }
 0x192   :  { %279 = vst [vmem:[#allocation2 + $0x68] sm:$0xff] %v263_v2  ;;  %v333_v7 = vmul.f32 %v263_v2, %v263_v2 }
 0x199   :  { %v264_v3 = vpop.trf.xlu0 }
 0x19a   :  { %280 = vst [vmem:[#allocation2 + $0x70] sm:$0xff] %v264_v3  ;;  %v334_v6 = vmul.f32 %v264_v3, %v264_v3 }
 0x1a1   :  { %v265_v4 = vpop.trf.xlu0 }
 0x1a2   :  { %281 = vst [vmem:[#allocation2 + $0x78] sm:$0xff] %v265_v4  ;;  %298 = vmatpush.msrb.mxu2 %v265_v4  ;;  %v335_v5 = vmul.f32 %v265_v4, %v265_v4 }
 0x1a3   :  { %370 = dma.vmem_to_hbm [thread:$0]  %s363_s24, 2048, %s365_s22, [#allocation3], %s574_s25, %s574_s25, %s575_s26  }
 0x1a4   :  { %299 = vmatpush.msrb.mxu2 %v264_v3  ;;  %336 = vmatpush.msrb.mxu3 %v335_v5 }
 0x1a6   :  { %300 = vmatpush.msrb.mxu2 %v263_v2  ;;  %337 = vmatpush.msrb.mxu3 %v334_v6 }
 0x1a8   :  { %301 = vmatpush.msrb.mxu2 %v262_v1  ;;  %338 = vmatpush.msrb.mxu3 %v333_v7 }
 0x1aa   :  { %302 = vmatpush.msrb.mxu2 %v261_v0  ;;  %339 = vmatpush.msrb.mxu3 %v332_v8 }
 0x1ac   :  { %303 = vmatpush.msrb.mxu2 %v260_v63  ;;  %340 = vmatpush.msrb.mxu3 %v331_v9 }
 0x1ae   :  { %304 = vmatpush.msrb.mxu2 %v259_v62  ;;  %341 = vmatpush.msrb.mxu3 %v330_v10 }
 0x1b0   :  { %305 = vmatpush.msrb.mxu2 %v258_v61  ;;  %342 = vmatpush.msrb.mxu3 %v329_v11 }
 0x1b2   :  { %306 = vmatpush.msrb.mxu2 %v766_v58  ;;  %343 = vmatpush.msrb.mxu3 %v328_v12 }
 0x1b4   :  { %307 = vmatpush.msrb.mxu2 %v763_v57  ;;  %344 = vmatpush.msrb.mxu3 %v327_v14 }
 0x1b6   :  { %308 = vmatpush.msrb.mxu2 %v760_v56  ;;  %345 = vmatpush.msrb.mxu3 %v326_v13 }
 0x1b8   :  { %309 = vmatpush.msrb.mxu2 %v757_v55  ;;  %346 = vmatpush.msrb.mxu3 %v325_v15 }
 0x1ba   :  { %310 = vmatpush.msrb.mxu2 %v754_v54  ;;  %347 = vmatpush.msrb.mxu3 %v324_v16 }
 0x1bc   :  { %311 = vmatpush.msrb.mxu2 %v751_v53  ;;  %348 = vmatpush.msrb.mxu3 %v323_v17 }
 0x1be   :  { %312 = vmatpush.msrb.mxu2 %v748_v52  ;;  %349 = vmatpush.msrb.mxu3 %v322_v18 }
 0x1c0   :  { %313 = vmatpush.msrb.mxu2 %v745_v51  ;;  %350 = vmatpush.msrb.mxu3 %v321_v19  ;;  %v207_v51 = vpop.f32.mrf.mxu1 }
 0x1c1   :  { %314 = vmatmul.f32.vlgmr.msrb.gmra.mxu2 %v572_v21  ;;  %v208_v52 = vadd.f32 %v469_v22, %v207_v51 }
 0x1c2   :  { %351 = vmatpush.msrb.mxu3 %v320_v20 }
 0x1c3   :  { %352 = vmatmul.f32.vlgmr.msrb.gmra.mxu3 %v572_v21  ;;  %289 = vst [vmem:[#allocation4 + $0x38] sm:$0xff] %v208_v52 }
 0x1c8   :  { %v210_v53 = vpop.f32.mrf.mxu1 }
 0x1c9   :  { %v211_v54 = vadd.f32 %v469_v22, %v210_v53 }
 0x1cb   :  { %290 = vst [vmem:[#allocation4 + $0x40] sm:$0xff] %v211_v54 }
 0x1cc   :  { %383 = dma.vmem_to_hbm [thread:$0]  %s376_s5, 2048, %s378_s9, [#allocation5], %s574_s25, %s574_s25, %s575_s26  }
 0x244   :  { %v315_v55 = vpop.f32.mrf.mxu2 }
 0x245   :  { %v318_v56 = vmul.f32 0.03125, %v315_v55 }
 0x246   :  { %v353_v57 = vpop.f32.mrf.mxu3 }
 0x247   :  { %319 = vst [vmem:[#allocation6] sm:$0x1] %v318_v56  ;;  %v356_v58 = vmul.f32 0.03125, %v353_v57 }
 0x248   :  { %394 = dma.vmem_to_hbm [thread:$0]  %s390_s11, 16, %s392_s13, [#allocation5]  }
 0x249   :  { %357 = vst [vmem:[#allocation7] sm:$0x1] %v356_v58 }
 0x24a   :  { %405 = dma.vmem_to_hbm [thread:$0]  %s401_s15, 16, %s403_s17, [#allocation8]  }
 0x24b   :  { %566 = dma.done.wait [#allocation3], 2048  }
 0x24c   :  { %567 = vsyncadd [#allocation3], 4294965248 }
 0x24d   :  { %568 = dma.done.wait [#allocation5], 2064  }
 0x24e   :  { %569 = vsyncadd [#allocation5], 4294965232 }
 0x24f   :  { %570 = dma.done.wait [#allocation8], 16  }
 0x250   :  { %571 = vsyncadd [#allocation8], 4294967280 }
 0x251   :  { %422 = vsyncpa [#allocation3], 1 }
 0x252   :  { %423 = vsyncpa [#allocation5], 1 }
 0x253   :  { %424 = vsyncpa [#allocation8], 1 }

</bundles_post_ra>
